<compile_context>
chip_gen: v7x
topology: tpu7x:2x2x1
jax: 0.10.0
libtpu: 0.0.40
codegen_flags: <defaults>
</compile_context>

<pallas_src>
import functools

import jax
import jax.numpy as jnp
import numpy as np
from jax.experimental import pallas as pl
from jax.experimental.pallas import tpu as pltpu


def _residual_kernel(mask_ref, params_ref, x_ref, o_ref, *, W, K, INV_CNT, PADDED):
    """One channel-group block: depthwise conv + GELU + BN(batch stats) + skip.

    Block shapes (channel-major, batch+spatial flattened into the lane axis):
      mask_ref   : (K*K+1, L)      per-tap 'same' zero-pad masks; row K*K = valid lanes
      params_ref : (c_blk, K*K+3)  [conv w (K*K) | conv b | gamma | beta]
      x_ref      : (c_blk, L)
      o_ref      : (c_blk, L)
    """
    _, lanes = x_ref.shape
    kk = K * K
    p = K // 2

    x = x_ref[...].astype(jnp.float32)

    # --- depthwise conv, padding='same' (pad folded into per-tap masks) -----
    # Center tap: mask is all-ones and shift is zero -> a single per-channel
    # scalar multiply that also initializes the accumulator.
    ctr = p * K + p
    acc = x * params_ref[:, ctr:ctr + 1]
    for i in range(K):
        for j in range(K):
            if i == p and j == p:
                continue
            t = i * K + j
            off = (i - p) * W + (j - p)
            shifted = pltpu.roll(x, (-off) % lanes, axis=1)   # XLU slot, cheap
            # (1, L) mask * (c_blk, 1) weight -> coeff carrying the zero-pad
            acc = acc + shifted * (mask_ref[t:t + 1, :] * params_ref[:, t:t + 1])

    # conv bias, then exact erf-GELU (matches nn.GELU() default), reusing acc.
    acc = acc + params_ref[:, kk:kk + 1]
    acc = 0.5 * acc * (1.0 + jax.lax.erf(acc * 0.7071067811865476))

    if PADDED:
        # zero the pad lanes so the BN sums below stay exact
        acc = acc * mask_ref[kk:kk + 1, :]

    # --- BatchNorm2d: per-channel biased batch stats, single pass -----------
    s1 = jnp.sum(acc, axis=1, keepdims=True)            # (c_blk, 1)
    s2 = jnp.sum(acc * acc, axis=1, keepdims=True)
    mean = s1 * INV_CNT
    var = jnp.maximum(s2 * INV_CNT - mean * mean, 0.0)
    scale = jax.lax.rsqrt(var + 1e-5) * params_ref[:, kk + 1:kk + 2]
    shift = params_ref[:, kk + 2:kk + 3] - mean * scale

    # --- normalize + residual (x re-read from VMEM; keeps live slabs low) ---
    o_ref[...] = (acc * scale + shift
                  + x_ref[...].astype(jnp.float32)).astype(o_ref.dtype)


def _tap_masks(h, w, k, n, lanes_pad):
    """(k*k+1, lanes_pad) f32: per-tap in-bounds masks (tiled over N) + valid row."""
    p = k // 2
    hh = np.arange(h)[:, None]
    ww = np.arange(w)[None, :]
    rows = []
    for i in range(k):
        for j in range(k):
            di, dj = i - p, j - p
            m = ((hh + di >= 0) & (hh + di < h) &
                 (ww + dj >= 0) & (ww + dj < w))
            rows.append(np.tile(m.reshape(-1), n))
    rows.append(np.ones(n * h * w, dtype=bool))          # valid-lane row
    m = np.stack(rows).astype(np.float32)                # (k*k+1, n*h*w)
    if lanes_pad > m.shape[1]:
        m = np.pad(m, ((0, 0), (0, lanes_pad - m.shape[1])))
    return m


def _choose_c_blk(c, lanes, in_itemsize, k):
    """Channel block satisfying the BlockSpec rule (mult. of 8 or == C) and a VMEM budget."""
    def est_bytes(cb):
        slab = cb * lanes
        return (4 * slab * in_itemsize            # x + out blocks, double-buffered
                + 4 * slab * 4                    # ~4 live f32 temporaries in the body
                + 2 * (k * k + 1) * lanes * 4     # tap-mask block (double-buffered)
                + 2 * cb * (k * k + 3) * 4)       # fused params block

    budget = 24 * 1024 * 1024                     # headroom inside v7x's 64 MiB VMEM
    cands = sorted({d for d in range(1, c + 1)
                    if c % d == 0 and (d % 8 == 0 or d == c)}, reverse=True)
    c_blk = None
    for d in cands:                               # biggest block that fits
        if est_bytes(d) <= budget:
            c_blk = d
            break
    if c_blk is None:
        c_blk = cands[-1]                         # smallest legal block (see TODO above)
    # v7x has 2 TensorCores: prefer >= 2 parallel grid steps when it does not
    # cost sublane density (block stays a multiple of 8). No-op on v5e/v6e.
    half = c // 2
    if c_blk == c and c % 2 == 0 and half % 8 == 0 and est_bytes(half) <= budget:
        c_blk = half
    return c_blk, est_bytes(c_blk)


def residual_forward(x_nchw, weight, bias, gamma, beta):
    """x_nchw: (N, C, H, W); weight: (C, 1, k, k) depthwise; bias/gamma/beta: (C,)."""
    n, c, h, w = x_nchw.shape
    k = weight.shape[-1]
    hw = h * w
    l_real = n * hw
    l_pad = ((l_real + 127) // 128) * 128         # lane-dense (full-width vst) stores

    # One cheap transpose to channel-major, then free reshape to (C, N*H*W).
    x_c = jnp.transpose(x_nchw, (1, 0, 2, 3)).reshape(c, l_real)
    if l_pad > l_real:
        x_c = jnp.pad(x_c, ((0, 0), (0, l_pad - l_real)))

    # Fused per-channel parameters: [conv w (k*k) | conv b | gamma | beta].
    params = jnp.concatenate(
        [weight.reshape(c, k * k), bias.reshape(c, 1),
         gamma.reshape(c, 1), beta.reshape(c, 1)], axis=1).astype(jnp.float32)
    mask = jnp.asarray(_tap_masks(h, w, k, n, l_pad))  # (k*k+1, l_pad)

    c_blk, est = _choose_c_blk(c, l_pad, x_nchw.dtype.itemsize, k)
    grid = (c // c_blk,)
    vmem_limit = int(min(max(est * 3 // 2 + (2 << 20), 16 << 20), 64 << 20))

    kernel = functools.partial(_residual_kernel, W=w, K=k,
                               INV_CNT=1.0 / float(n * hw),
                               PADDED=(l_pad > l_real))

    out = pl.pallas_call(
        kernel,
        out_shape=jax.ShapeDtypeStruct((c, l_pad), x_nchw.dtype),
        grid_spec=pltpu.PrefetchScalarGridSpec(
            num_scalar_prefetch=0,
            grid=grid,
            in_specs=[
                pl.BlockSpec((k * k + 1, l_pad), lambda g: (0, 0)),   # tap masks
                pl.BlockSpec((c_blk, k * k + 3), lambda g: (g, 0)),   # fused params
                pl.BlockSpec((c_blk, l_pad), lambda g: (g, 0)),       # x
            ],
            out_specs=pl.BlockSpec((c_blk, l_pad), lambda g: (g, 0)),
        ),
        compiler_params=pltpu.CompilerParams(
            dimension_semantics=("parallel",),
            vmem_limit_bytes=vmem_limit),
    )(mask, params, x_c)

    out = out[:, :l_real].reshape(c, n, h, w)
    return jnp.transpose(out, (1, 0, 2, 3))


def _reference(x, weight, bias, gamma, beta):
    """Pure-JAX reference for a correctness sanity check."""
    n, c, h, w = x.shape
    y = jax.lax.conv_general_dilated(
        x, weight, window_strides=(1, 1), padding="SAME",
        dimension_numbers=("NCHW", "OIHW", "NCHW"),
        feature_group_count=c)
    y = y + bias[None, :, None, None]
    y = 0.5 * y * (1.0 + jax.lax.erf(y / jnp.sqrt(2.0)))
    mean = jnp.mean(y, axis=(0, 2, 3), keepdims=True)
    var = jnp.mean((y - mean) ** 2, axis=(0, 2, 3), keepdims=True)
    y = (y - mean) / jnp.sqrt(var + 1e-5)
    y = y * gamma[None, :, None, None] + beta[None, :, None, None]
    return y + x


if __name__ == "__main__":
    # Small shapes: batch=2, dim(channels)=4, spatial=16, kernel_size=3
    N, C, H, W, K = 2, 4, 16, 16, 3

    key = jax.random.PRNGKey(0)
    kx, kw, kb = jax.random.split(key, 3)

    x = jax.random.normal(kx, (N, C, H, W), dtype=jnp.float32)
    # deterministic parameter init (Conv2d: depthwise weight (C,1,K,K) + bias)
    weight = jax.random.normal(kw, (C, 1, K, K), dtype=jnp.float32) * 0.2
    bias = jax.random.normal(kb, (C,), dtype=jnp.float32) * 0.1
    gamma = jnp.ones((C,), dtype=jnp.float32)   # BatchNorm2d default init
    beta = jnp.zeros((C,), dtype=jnp.float32)

    out = residual_forward(x, weight, bias, gamma, beta)
    out = jax.block_until_ready(out)

    ref = jax.block_until_ready(_reference(x, weight, bias, gamma, beta))
    assert out.shape == (N, C, H, W)
    assert jnp.allclose(out, ref, atol=1e-4, rtol=1e-4), "mismatch vs reference"

    print("KERNEL_OK")
</pallas_src>

<mosaic_0001>
module attributes {stable_mosaic.version = 11 : i64} {
  func.func @_residual_kernel(%arg0: i32, %arg1: memref<10x512xf32, #tpu.memory_space<vmem>>, %arg2: memref<4x12xf32, #tpu.memory_space<vmem>>, %arg3: memref<4x512xf32, #tpu.memory_space<vmem>>, %arg4: memref<4x512xf32, #tpu.memory_space<vmem>>) attributes {dimension_semantics = [#tpu.dimension_semantics<parallel>], iteration_bounds = array<i64: 1>, scalar_prefetch = 0 : i64, scratch_operands = 0 : i64, tpu.core_type = #tpu.core_type<tc>, window_params = [{pipeline_mode = #tpu.pipeline_mode<synchronous>, transform_indices = @transform_0, window_bounds = array<i64: 10, 512>}, {transform_indices = @transform_1, window_bounds = array<i64: 4, 12>}, {transform_indices = @transform_2, window_bounds = array<i64: 4, 512>}, {transform_indices = @transform_3, window_bounds = array<i64: 4, 512>}]} {
    %c0 = arith.constant 0 : index
    %c0_0 = arith.constant 0 : index
    %0 = vector.load %arg3[%c0, %c0_0] : memref<4x512xf32, #tpu.memory_space<vmem>>, vector<4x512xf32>
    %c0_1 = arith.constant 0 : index
    %c4 = arith.constant 4 : index
    %1 = vector.load %arg2[%c0_1, %c4] : memref<4x12xf32, #tpu.memory_space<vmem>>, vector<4x1xf32>
    %2 = vector.broadcast %1 : vector<4x1xf32> to vector<4x512xf32>
    %3 = arith.mulf %0, %2 : vector<4x512xf32>
    %c17_i32 = arith.constant 17 : i32
    %4 = tpu.dynamic_rotate %0 by %c17_i32 dim 1 : vector<4x512xf32>, i32 -> vector<4x512xf32>
    %c0_2 = arith.constant 0 : index
    %c0_3 = arith.constant 0 : index
    %5 = vector.load %arg1[%c0_2, %c0_3] : memref<10x512xf32, #tpu.memory_space<vmem>>, vector<1x512xf32>
    %c0_4 = arith.constant 0 : index
    %c0_5 = arith.constant 0 : index
    %6 = vector.load %arg2[%c0_4, %c0_5] : memref<4x12xf32, #tpu.memory_space<vmem>>, vector<4x1xf32>
    %7 = vector.broadcast %5 : vector<1x512xf32> to vector<4x512xf32>
    %8 = vector.broadcast %6 : vector<4x1xf32> to vector<4x512xf32>
    %9 = arith.mulf %7, %8 : vector<4x512xf32>
    %10 = arith.mulf %4, %9 : vector<4x512xf32>
    %11 = arith.addf %3, %10 : vector<4x512xf32>
    %c16_i32 = arith.constant 16 : i32
    %12 = tpu.dynamic_rotate %0 by %c16_i32 dim 1 : vector<4x512xf32>, i32 -> vector<4x512xf32>
    %c1 = arith.constant 1 : index
    %c0_6 = arith.constant 0 : index
    %13 = vector.load %arg1[%c1, %c0_6] : memref<10x512xf32, #tpu.memory_space<vmem>>, vector<1x512xf32>
    %c0_7 = arith.constant 0 : index
    %c1_8 = arith.constant 1 : index
    %14 = vector.load %arg2[%c0_7, %c1_8] : memref<4x12xf32, #tpu.memory_space<vmem>>, vector<4x1xf32>
    %15 = vector.broadcast %13 : vector<1x512xf32> to vector<4x512xf32>
    %16 = vector.broadcast %14 : vector<4x1xf32> to vector<4x512xf32>
    %17 = arith.mulf %15, %16 : vector<4x512xf32>
    %18 = arith.mulf %12, %17 : vector<4x512xf32>
    %19 = arith.addf %11, %18 : vector<4x512xf32>
    %c15_i32 = arith.constant 15 : i32
    %20 = tpu.dynamic_rotate %0 by %c15_i32 dim 1 : vector<4x512xf32>, i32 -> vector<4x512xf32>
    %c2 = arith.constant 2 : index
    %c0_9 = arith.constant 0 : index
    %21 = vector.load %arg1[%c2, %c0_9] : memref<10x512xf32, #tpu.memory_space<vmem>>, vector<1x512xf32>
    %c0_10 = arith.constant 0 : index
    %c2_11 = arith.constant 2 : index
    %22 = vector.load %arg2[%c0_10, %c2_11] : memref<4x12xf32, #tpu.memory_space<vmem>>, vector<4x1xf32>
    %23 = vector.broadcast %21 : vector<1x512xf32> to vector<4x512xf32>
    %24 = vector.broadcast %22 : vector<4x1xf32> to vector<4x512xf32>
    %25 = arith.mulf %23, %24 : vector<4x512xf32>
    %26 = arith.mulf %20, %25 : vector<4x512xf32>
    %27 = arith.addf %19, %26 : vector<4x512xf32>
    %c1_i32 = arith.constant 1 : i32
    %28 = tpu.dynamic_rotate %0 by %c1_i32 dim 1 : vector<4x512xf32>, i32 -> vector<4x512xf32>
    %c3 = arith.constant 3 : index
    %c0_12 = arith.constant 0 : index
    %29 = vector.load %arg1[%c3, %c0_12] : memref<10x512xf32, #tpu.memory_space<vmem>>, vector<1x512xf32>
    %c0_13 = arith.constant 0 : index
    %c3_14 = arith.constant 3 : index
    %30 = vector.load %arg2[%c0_13, %c3_14] : memref<4x12xf32, #tpu.memory_space<vmem>>, vector<4x1xf32>
    %31 = vector.broadcast %29 : vector<1x512xf32> to vector<4x512xf32>
    %32 = vector.broadcast %30 : vector<4x1xf32> to vector<4x512xf32>
    %33 = arith.mulf %31, %32 : vector<4x512xf32>
    %34 = arith.mulf %28, %33 : vector<4x512xf32>
    %35 = arith.addf %27, %34 : vector<4x512xf32>
    %c511_i32 = arith.constant 511 : i32
    %36 = tpu.dynamic_rotate %0 by %c511_i32 dim 1 : vector<4x512xf32>, i32 -> vector<4x512xf32>
    %c5 = arith.constant 5 : index
    %c0_15 = arith.constant 0 : index
    %37 = vector.load %arg1[%c5, %c0_15] : memref<10x512xf32, #tpu.memory_space<vmem>>, vector<1x512xf32>
    %c0_16 = arith.constant 0 : index
    %c5_17 = arith.constant 5 : index
    %38 = vector.load %arg2[%c0_16, %c5_17] : memref<4x12xf32, #tpu.memory_space<vmem>>, vector<4x1xf32>
    %39 = vector.broadcast %37 : vector<1x512xf32> to vector<4x512xf32>
    %40 = vector.broadcast %38 : vector<4x1xf32> to vector<4x512xf32>
    %41 = arith.mulf %39, %40 : vector<4x512xf32>
    %42 = arith.mulf %36, %41 : vector<4x512xf32>
    %43 = arith.addf %35, %42 : vector<4x512xf32>
    %c497_i32 = arith.constant 497 : i32
    %44 = tpu.dynamic_rotate %0 by %c497_i32 dim 1 : vector<4x512xf32>, i32 -> vector<4x512xf32>
    %c6 = arith.constant 6 : index
    %c0_18 = arith.constant 0 : index
    %45 = vector.load %arg1[%c6, %c0_18] : memref<10x512xf32, #tpu.memory_space<vmem>>, vector<1x512xf32>
    %c0_19 = arith.constant 0 : index
    %c6_20 = arith.constant 6 : index
    %46 = vector.load %arg2[%c0_19, %c6_20] : memref<4x12xf32, #tpu.memory_space<vmem>>, vector<4x1xf32>
    %47 = vector.broadcast %45 : vector<1x512xf32> to vector<4x512xf32>
    %48 = vector.broadcast %46 : vector<4x1xf32> to vector<4x512xf32>
    %49 = arith.mulf %47, %48 : vector<4x512xf32>
    %50 = arith.mulf %44, %49 : vector<4x512xf32>
    %51 = arith.addf %43, %50 : vector<4x512xf32>
    %c496_i32 = arith.constant 496 : i32
    %52 = tpu.dynamic_rotate %0 by %c496_i32 dim 1 : vector<4x512xf32>, i32 -> vector<4x512xf32>
    %c7 = arith.constant 7 : index
    %c0_21 = arith.constant 0 : index
    %53 = vector.load %arg1[%c7, %c0_21] : memref<10x512xf32, #tpu.memory_space<vmem>>, vector<1x512xf32>
    %c0_22 = arith.constant 0 : index
    %c7_23 = arith.constant 7 : index
    %54 = vector.load %arg2[%c0_22, %c7_23] : memref<4x12xf32, #tpu.memory_space<vmem>>, vector<4x1xf32>
    %55 = vector.broadcast %53 : vector<1x512xf32> to vector<4x512xf32>
    %56 = vector.broadcast %54 : vector<4x1xf32> to vector<4x512xf32>
    %57 = arith.mulf %55, %56 : vector<4x512xf32>
    %58 = arith.mulf %52, %57 : vector<4x512xf32>
    %59 = arith.addf %51, %58 : vector<4x512xf32>
    %c495_i32 = arith.constant 495 : i32
    %60 = tpu.dynamic_rotate %0 by %c495_i32 dim 1 : vector<4x512xf32>, i32 -> vector<4x512xf32>
    %c8 = arith.constant 8 : index
    %c0_24 = arith.constant 0 : index
    %61 = vector.load %arg1[%c8, %c0_24] : memref<10x512xf32, #tpu.memory_space<vmem>>, vector<1x512xf32>
    %c0_25 = arith.constant 0 : index
    %c8_26 = arith.constant 8 : index
    %62 = vector.load %arg2[%c0_25, %c8_26] : memref<4x12xf32, #tpu.memory_space<vmem>>, vector<4x1xf32>
    %63 = vector.broadcast %61 : vector<1x512xf32> to vector<4x512xf32>
    %64 = vector.broadcast %62 : vector<4x1xf32> to vector<4x512xf32>
    %65 = arith.mulf %63, %64 : vector<4x512xf32>
    %66 = arith.mulf %60, %65 : vector<4x512xf32>
    %67 = arith.addf %59, %66 : vector<4x512xf32>
    %c0_27 = arith.constant 0 : index
    %c9 = arith.constant 9 : index
    %68 = vector.load %arg2[%c0_27, %c9] : memref<4x12xf32, #tpu.memory_space<vmem>>, vector<4x1xf32>
    %69 = vector.broadcast %68 : vector<4x1xf32> to vector<4x512xf32>
    %70 = arith.addf %67, %69 : vector<4x512xf32>
    %cst = arith.constant 5.000000e-01 : f32
    %71 = vector.broadcast %cst : f32 to vector<4x512xf32>
    %72 = arith.mulf %71, %70 : vector<4x512xf32>
    %cst_28 = arith.constant 0.707106769 : f32
    %73 = vector.broadcast %cst_28 : f32 to vector<4x512xf32>
    %74 = arith.mulf %70, %73 : vector<4x512xf32>
    %75 = math.erf %74 : vector<4x512xf32>
    %cst_29 = arith.constant 1.000000e+00 : f32
    %76 = vector.broadcast %cst_29 : f32 to vector<4x512xf32>
    %77 = arith.addf %76, %75 : vector<4x512xf32>
    %78 = arith.mulf %72, %77 : vector<4x512xf32>
    %cst_30 = arith.constant dense<0.000000e+00> : vector<4xf32>
    %79 = vector.multi_reduction <add>, %78, %cst_30 [1] : vector<4x512xf32> to vector<4xf32>
    %80 = vector.shape_cast %79 : vector<4xf32> to vector<4x1xf32>
    %81 = arith.mulf %78, %78 : vector<4x512xf32>
    %cst_31 = arith.constant dense<0.000000e+00> : vector<4xf32>
    %82 = vector.multi_reduction <add>, %81, %cst_31 [1] : vector<4x512xf32> to vector<4xf32>
    %83 = vector.shape_cast %82 : vector<4xf32> to vector<4x1xf32>
    %cst_32 = arith.constant 0.001953125 : f32
    %84 = vector.broadcast %cst_32 : f32 to vector<4x1xf32>
    %85 = arith.mulf %80, %84 : vector<4x1xf32>
    %cst_33 = arith.constant 0.001953125 : f32
    %86 = vector.broadcast %cst_33 : f32 to vector<4x1xf32>
    %87 = arith.mulf %83, %86 : vector<4x1xf32>
    %88 = arith.mulf %85, %85 : vector<4x1xf32>
    %89 = arith.subf %87, %88 : vector<4x1xf32>
    %cst_34 = arith.constant 0.000000e+00 : f32
    %90 = vector.broadcast %cst_34 : f32 to vector<4x1xf32>
    %91 = arith.maximumf %89, %90 : vector<4x1xf32>
    %cst_35 = arith.constant 9.99999974E-6 : f32
    %92 = vector.broadcast %cst_35 : f32 to vector<4x1xf32>
    %93 = arith.addf %91, %92 : vector<4x1xf32>
    %94 = math.rsqrt %93 : vector<4x1xf32>
    %c0_36 = arith.constant 0 : index
    %c10 = arith.constant 10 : index
    %95 = vector.load %arg2[%c0_36, %c10] : memref<4x12xf32, #tpu.memory_space<vmem>>, vector<4x1xf32>
    %96 = arith.mulf %94, %95 : vector<4x1xf32>
    %c0_37 = arith.constant 0 : index
    %c11 = arith.constant 11 : index
    %97 = vector.load %arg2[%c0_37, %c11] : memref<4x12xf32, #tpu.memory_space<vmem>>, vector<4x1xf32>
    %98 = arith.mulf %85, %96 : vector<4x1xf32>
    %99 = arith.subf %97, %98 : vector<4x1xf32>
    %100 = vector.broadcast %96 : vector<4x1xf32> to vector<4x512xf32>
    %101 = arith.mulf %78, %100 : vector<4x512xf32>
    %102 = vector.broadcast %99 : vector<4x1xf32> to vector<4x512xf32>
    %103 = arith.addf %101, %102 : vector<4x512xf32>
    %c0_38 = arith.constant 0 : index
    %c0_39 = arith.constant 0 : index
    %104 = vector.load %arg3[%c0_38, %c0_39] : memref<4x512xf32, #tpu.memory_space<vmem>>, vector<4x512xf32>
    %105 = arith.addf %103, %104 : vector<4x512xf32>
    %c0_40 = arith.constant 0 : index
    %c0_41 = arith.constant 0 : index
    %106 = vector.load %arg4[%c0_40, %c0_41] : memref<4x512xf32, #tpu.memory_space<vmem>>, vector<4x512xf32>
    tpu.vector_store %arg4[%c0_40, %c0_41], %105 {strides = array<i32>} : memref<4x512xf32, #tpu.memory_space<vmem>>, vector<4x512xf32>,
    return
  }
  func.func @transform_0(%arg0: i32) -> (i32, i32) {
    %c0_i32 = arith.constant 0 : i32
    %c0_i32_0 = arith.constant 0 : i32
    %c0_i32_1 = arith.constant 0 : i32
    return %c0_i32, %c0_i32_0 : i32, i32
  }
  func.func @transform_1(%arg0: i32) -> (i32, i32) {
    %c0_i32 = arith.constant 0 : i32
    %c0_i32_0 = arith.constant 0 : i32
    return %arg0, %c0_i32 : i32, i32
  }
  func.func @transform_2(%arg0: i32) -> (i32, i32) {
    %c0_i32 = arith.constant 0 : i32
    %c0_i32_0 = arith.constant 0 : i32
    return %arg0, %c0_i32 : i32, i32
  }
  func.func @transform_3(%arg0: i32) -> (i32, i32) {
    %c0_i32 = arith.constant 0 : i32
    %c0_i32_0 = arith.constant 0 : i32
    return %arg0, %c0_i32 : i32, i32
  }
}

</mosaic_0001>

<bundles_post_ra>
// kernel: tpu_custom_call.1
= control target key start
LH: loop header
LB: loop body
LE: loop exit
PB: predicated region body
PF: predicated region fallthrough
CT: control target
= control target key end

     0   :  { %8 = vsyncpa [#allocation3], 0  ;;  %s1190_s0 = inlined_call_operand.hbm [shape: f32[10,512], index: 0, kind: input, shape index: {}]   ;;  %s1191_s1 = inlined_call_operand.hbm [shape: f32[4,12], index: 1, kind: input, shape index: {}]   ;;  %s1192_s2 = inlined_call_operand.hbm [shape: f32[4,512], index: 2, kind: input, shape index: {}]   ;;  %s1193_s3 = inlined_call_operand.hbm [shape: f32[4,512], index: 3, kind: output, shape index: {}]  }
   0x1   :  { %9 = vsyncpa [#allocation6], 0 }
   0x2   :  { %10 = vsyncpa [#allocation4], 0  ;;  %s818_s12 = smov [#allocation5]   ;;  %s819_s14 = smov [#allocation2]  }
   0x3   :  { %s29_s13 = sshll.u32 %s818_s12, 4  ;;  %s16_s15 = sshll.u32 %s819_s14, 4  ;;  %s30_s13 = int_to_ptr.vmem [resolvable:$true] %s29_s13  ;;  %s865_s15 = int_to_ptr.vmem [resolvable:$true] %s16_s15 }
   0x4   :  { %s724_s18 = scalar_lea.hbm %s1191_s1, 64 }
   0x5   :  { %p725_p0 = scmp.ne.s32.totalorder %s1191_s1, %s724_s18  ;;  %p728_p1 = scmp.lt.u32.totalorder %s724_s18, %s1191_s1 }
   0x7   :  { %p730_p2 = pnand %p728_p1, %p725_p0 }
   0x9   :  { %733 = shalt.err (!%p730_p2)
}
   0xa   :  { %s734_s23 = scalar_lea.vmem %s30_s13, 64  ;;  %p739_p4 = scmp.lt.s32.totalorder %s30_s13, %s30_s13 }
   0xb   :  { %p735_p3 = scmp.ne.s32.totalorder %s30_s13, %s734_s23  ;;  %p740_p5 = scmp.lt.s32.totalorder %s734_s23, %s734_s23 }
   0xd   :  { %p741_p6 = por %p740_p5, %p739_p4 }
   0xf   :  { %p742_p7 = pnand %p741_p6, %p735_p3 }
  0x11   :  { %745 = shalt.err (!%p742_p7)
}
  0x12   :  { %32 = dma.hbm_to_vmem [thread:$0]  %s1191_s1, 64, %s30_s13, [#allocation6]  }
  0x13   :  { %s746_s28 = scalar_lea.hbm %s1190_s0, 1024 }
  0x14   :  { %p747_p8 = scmp.ne.s32.totalorder %s1190_s0, %s746_s28  ;;  %p750_p9 = scmp.lt.u32.totalorder %s746_s28, %s1190_s0 }
  0x16   :  { %p752_p10 = pnand %p750_p9, %p747_p8 }
  0x18   :  { %755 = shalt.err (!%p752_p10)
}
  0x19   :  { %s756_s6 = scalar_lea.vmem %s865_s15, 1024  ;;  %p761_p12 = scmp.lt.s32.totalorder %s865_s15, %s865_s15 }
  0x1a   :  { %p757_p11 = scmp.ne.s32.totalorder %s865_s15, %s756_s6  ;;  %p762_p13 = scmp.lt.s32.totalorder %s756_s6, %s756_s6 }
  0x1c   :  { %p763_p0 = por %p762_p13, %p761_p12 }
  0x1e   :  { %p764_p1 = pnand %p763_p0, %p757_p11 }
  0x20   :  { %767 = shalt.err (!%p764_p1)
}
  0x21   :  { %s820_s1 = smov 512   ;;  %s821_s7 = smov 32  }
  0x22   :  { %22 = dma.hbm_to_vmem [thread:$0]  %s1190_s0, 1024, %s865_s15, [#allocation3], %s820_s1, %s820_s1, %s821_s7  }
  0x23   :  { %s822_s10 = smov [#allocation7]   ;;  %s768_s14 = scalar_lea.hbm %s1192_s2, 256 }
  0x24   :  { %s39_s11 = sshll.u32 %s822_s10, 4  ;;  %p769_p2 = scmp.ne.s32.totalorder %s1192_s2, %s768_s14  ;;  %s40_s11 = int_to_ptr.vmem [resolvable:$true] %s39_s11 }
  0x25   :  { %p772_p3 = scmp.lt.u32.totalorder %s768_s14, %s1192_s2 }
  0x27   :  { %p774_p4 = pnand %p772_p3, %p769_p2 }
  0x29   :  { %777 = shalt.err (!%p774_p4)
}
  0x2a   :  { %s778_s20 = scalar_lea.vmem %s40_s11, 256  ;;  %p783_p6 = scmp.lt.s32.totalorder %s40_s11, %s40_s11 }
  0x2b   :  { %p779_p5 = scmp.ne.s32.totalorder %s40_s11, %s778_s20  ;;  %p784_p7 = scmp.lt.s32.totalorder %s778_s20, %s778_s20 }
  0x2d   :  { %p785_p8 = por %p784_p7, %p783_p6 }
  0x2f   :  { %p786_p9 = pnand %p785_p8, %p779_p5 }
  0x31   :  { %789 = shalt.err (!%p786_p9)
}
  0x32   :  { %42 = dma.hbm_to_vmem [thread:$0]  %s1192_s2, 256, %s40_s11, [#allocation6]  }
  0x33   :  { %812 = dma.done.wait [#allocation3], 1024  }
  0x34   :  { %813 = vsyncadd [#allocation3], 4294966272 }
  0x35   :  { %814 = dma.done.wait [#allocation6], 320  }
  0x36   :  { %815 = vsyncadd [#allocation6], 4294966976  ;;  %v823_v0 = vmov 1   ;;  %v824_v1 = vmov 0   ;;  %v151_v2 = vld [vmem:[#allocation5] sm:$0xf]  ;;  %v62_v29 = vlaneseq }
  0x37   :  { %706 = vset.pattern.permute.xlu1 %v823_v0  ;;  %704 = vset.pattern.permute.xlu0 %v824_v1  ;;  %v91_v3 = vld [vmem:[#allocation5] sm:$0xf]  ;;  %v825_v6 = vmov 2   ;;  %v826_v7 = vmov 4   ;;  %v908_v8 = vld [vmem:[#allocation7] sm:$0xff]  ;;  %v910_v9 = vld [vmem:[#allocation7 + $0x8] sm:$0xff] }
  0x38   :  { %175 = vperm.xlu1 %706, %v151_v2   ;;  %115 = vperm.xlu0 %704, %v91_v3   ;;  %v211_v4 = vld [vmem:[#allocation5] sm:$0xf]  ;;  %v827_v11 = vmov 3   ;;  %s828_s2 = smov 17   ;;  %v72_v12 = vcombine.high %v910_v9, %v910_v9  ;;  %v71_v13 = vcombine.high %v908_v8, %v908_v8  ;;  %v829_v14 = vmov 7   ;;  %s831_s21 = smov 16  }
  0x39   :  { %v54_v5 = vld [vmem:[#allocation5] sm:$0xf]  ;;  %v830_v15 = vmov 5   ;;  %v832_v17 = vmov 6   ;;  %s833_s22 = smov 15   ;;  %s834_s23 = smov 1  }
  0x3a   :  { %v271_v10 = vld [vmem:[#allocation5] sm:$0xf]  ;;  %v835_v20 = vmov 8   ;;  %s836_s24 = smov 127   ;;  %v837_v22 = vmov 9   ;;  %s838_s25 = smov 113  }
  0x3b   :  { %v331_v16 = vld [vmem:[#allocation5] sm:$0xf]  ;;  %s839_s26 = smov 112   ;;  %s840_s27 = smov 111   ;;  %v63_v32 = vshrl.u32 %v62_v29, 7  ;;  %v950_v38 = vand.u32 127, %v62_v29 }
  0x3c   :  { %707 = vset.pattern.permute.xlu1 %v825_v6  ;;  %705 = vset.pattern.permute.xlu0 %v826_v7  ;;  %v391_v18 = vld [vmem:[#allocation5] sm:$0xf]  ;;  %v841_v34 = vmov 839922192   ;;  %vm587_vm8 = vcmask 1043456   ;;  %s844_s28 = smov [#allocation8]  }
  0x3d   :  { %235 = vperm.xlu1 %707, %v211_v4   ;;  %57 = vperm.xlu0 %705, %v54_v5   ;;  %v451_v19 = vld [vmem:[#allocation5] sm:$0xf]  ;;  %v60_v35 = vunpack.c.l.s4 %v841_v34  ;;  %v952_v39 = vsub.s32 0, %v63_v32  ;;  %v954_v40 = vsub.s32 1, %v63_v32  ;;  %vm85_vm0 = vcmp.lt.s32.totalorder %v950_v38, 17  ;;  %s667_s29 = sshll.u32 %s844_s28, 4  ;;  %s668_s29 = int_to_ptr.vmem [resolvable:$true] %s667_s29 }
  0x3e   :  { %v511_v21 = vld [vmem:[#allocation5] sm:$0xf]  ;;  %vm144_vm1 = vcmp.lt.s32.totalorder %v950_v38, 16  ;;  %vm204_vm2 = vcmp.lt.s32.totalorder %v950_v38, 15  ;;  %vm264_vm3 = vcmp.lt.s32.totalorder %v950_v38, 1  ;;  %vm324_vm4 = vcmp.lt.s32.totalorder %v950_v38, 127  ;;  %p795_p11 = scmp.lt.s32.totalorder %s668_s29, %s668_s29 }
  0x3f   :  { %v556_v23 = vld [vmem:[#allocation5] sm:$0xf]  ;;  %v61_v42 = vunpack.c.0.s8 %v60_v35  ;;  %vm384_vm5 = vcmp.lt.s32.totalorder %v950_v38, 113  ;;  %vm444_vm6 = vcmp.lt.s32.totalorder %v950_v38, 112  ;;  %vm504_vm7 = vcmp.lt.s32.totalorder %v950_v38, 111  ;;  %s790_s30 = scalar_lea.vmem %s668_s29, 256 }
  0x40   :  { %v948_v36 = vld [vmem:[#allocation2] ss:$8 sm:$0xf]  ;;  %v962_v45 = vld [vmem:[#allocation2 + $0x1] ss:$8 sm:$0xf]  ;;  %p791_p10 = scmp.ne.s32.totalorder %s668_s29, %s790_s30  ;;  %p796_p12 = scmp.lt.s32.totalorder %s790_s30, %s790_s30 }
  0x41   :  { %708 = vset.pattern.permute.xlu1 %v827_v11  ;;  %75 = vrot.lane.b32.xlu0 %v908_v8, %s828_s2  ;;  %v96_v43 = vrot.slane %v948_v36, %v952_v39  ;;  %v100_v44 = vrot.slane %v948_v36, %v954_v40  ;;  %v156_v48 = vrot.slane %v962_v45, %v952_v39  ;;  %v986_v57 = vld [vmem:[#allocation2 + $0x2] ss:$8 sm:$0xf] }
  0x42   :  { %295 = vperm.xlu1 %708, %v271_v10   ;;  %711 = vset.pattern.permute.xlu0 %v829_v14  ;;  %v160_v49 = vrot.slane %v962_v45, %v954_v40  ;;  %v973_v50 = vsub.s32 %v61_v42, %v63_v32  ;;  %v220_v2 = vrot.slane %v986_v57, %v954_v40  ;;  %p797_p13 = por %p796_p12, %p795_p11 }
  0x43   :  { %v216_v6 = vrot.slane %v986_v57, %v952_v39 }
  0x44   :  { %p798_p0 = pnand %p797_p13, %p791_p10 }
  0x45   :  { %81 = vrot.lane.b32.xlu0 %v72_v12, %s828_s2 }
  0x46   :  { %77 = vrot.lane.b32.xlu1 %v71_v13, %s828_s2 }
  0x47   :  { %709 = vset.pattern.permute.xlu1 %v830_v15 }
  0x49   :  { %136 = vrot.lane.b32.xlu0 %v908_v8, %s831_s21 }
  0x4a   :  { %355 = vperm.xlu1 %709, %v331_v16  }
  0x4d   :  { %142 = vrot.lane.b32.xlu0 %v72_v12, %s831_s21 }
  0x4e   :  { %138 = vrot.lane.b32.xlu1 %v71_v13, %s831_s21 }
  0x4f   :  { %710 = vset.pattern.permute.xlu1 %v832_v17  ;;  %v1015_v17 = vsub.s32 2, %v63_v32 }
  0x51   :  { %79 = vrot.lane.b32.xlu0 %v910_v9, %s828_s2 }
  0x52   :  { %415 = vperm.xlu1 %710, %v391_v18   ;;  %v1017_v18 = vsub.s32 3, %v63_v32  ;;  %v164_v32 = vrot.slane %v962_v45, %v1015_v17 }
  0x55   :  { %198 = vrot.lane.b32.xlu0 %v71_v13, %s833_s22 }
  0x56   :  { %196 = vrot.lane.b32.xlu1 %v908_v8, %s833_s22 }
  0x59   :  { %475 = vperm.xlu0 %711, %v451_v19  }
  0x5a   :  { %202 = vrot.lane.b32.xlu1 %v72_v12, %s833_s22 }
  0x5d   :  { %258 = vrot.lane.b32.xlu0 %v71_v13, %s834_s23 }
  0x5e   :  { %712 = vset.pattern.permute.xlu0 %v835_v20  ;;  %140 = vrot.lane.b32.xlu1 %v910_v9, %s831_s21 }
  0x61   :  { %535 = vperm.xlu0 %712, %v511_v21  }
  0x62   :  { %256 = vrot.lane.b32.xlu1 %v908_v8, %s834_s23 }
  0x65   :  { %318 = vrot.lane.b32.xlu0 %v71_v13, %s836_s24 }
  0x66   :  { %262 = vrot.lane.b32.xlu1 %v72_v12, %s834_s23  ;;  %713 = vset.pattern.permute.xlu0 %v837_v22 }
  0x69   :  { %260 = vrot.lane.b32.xlu0 %v910_v9, %s834_s23 }
  0x6a   :  { %200 = vrot.lane.b32.xlu1 %v910_v9, %s833_s22 }
  0x6d   :  { %378 = vrot.lane.b32.xlu0 %v71_v13, %s838_s25 }
  0x6e   :  { %316 = vrot.lane.b32.xlu1 %v908_v8, %s836_s24 }
  0x71   :  { %322 = vrot.lane.b32.xlu0 %v72_v12, %s836_s24 }
  0x72   :  { %320 = vrot.lane.b32.xlu1 %v910_v9, %s836_s24 }
  0x75   :  { %438 = vrot.lane.b32.xlu0 %v71_v13, %s839_s26 }
  0x76   :  { %376 = vrot.lane.b32.xlu1 %v908_v8, %s838_s25 }
  0x79   :  { %559 = vperm.xlu0 %713, %v556_v23   ;;  %v104_v23 = vrot.slane %v948_v36, %v1015_v17 }
  0x7a   :  { %380 = vrot.lane.b32.xlu1 %v910_v9, %s838_s25 }
  0x7d   :  { %498 = vrot.lane.b32.xlu0 %v71_v13, %s840_s27 }
  0x7e   :  { %436 = vrot.lane.b32.xlu1 %v908_v8, %s839_s26 }
  0x81   :  { %442 = vrot.lane.b32.xlu0 %v72_v12, %s839_s26 }
  0x82   :  { %440 = vrot.lane.b32.xlu1 %v910_v9, %s839_s26 }
  0x86   :  { %382 = vrot.lane.b32.xlu1 %v72_v12, %s838_s25 }
  0x8a   :  { %496 = vrot.lane.b32.xlu1 %v908_v8, %s840_s27 }
  0x8e   :  { %500 = vrot.lane.b32.xlu1 %v910_v9, %s840_s27 }
  0x92   :  { %502 = vrot.lane.b32.xlu1 %v72_v12, %s840_s27 }
  0xb7   :  { %v936_v24 = vpop.permute.xlu1 %175  ;;  %v938_v25 = vpop.permute.xlu0 %115 }
  0xb8   :  { %v118_v51 = vmul.f32 %v938_v25, %v96_v43  ;;  %v119_v52 = vmul.f32 %v938_v25, %v100_v44  ;;  %v178_v58 = vmul.f32 %v936_v24, %v156_v48  ;;  %v179_v0 = vmul.f32 %v936_v24, %v160_v49 }
  0xb9   :  { %v120_v48 = vmul.f32 %v938_v25, %v104_v23 }
  0xbc   :  { %v940_v26 = vpop.permute.xlu1 %235  ;;  %v58_v27 = vpop.permute.xlu0 %57 }
  0xbd   :  { %v996_v61 = vrot.slane %v58_v27, %v973_v50  ;;  %v239_v14 = vmul.f32 %v940_v26, %v220_v2  ;;  %v238_v15 = vmul.f32 %v940_v26, %v216_v6  ;;  %v108_v27 = vrot.slane %v948_v36, %v1017_v18 }
  0xbe   :  { %v168_v36 = vrot.slane %v962_v45, %v1017_v18 }
  0xbf   :  { %v67_v7 = vmul.f32 %v996_v61, %v908_v8  ;;  %v121_v49 = vmul.f32 %v938_v25, %v108_v27  ;;  %v180_v25 = vmul.f32 %v936_v24, %v164_v32 }
  0xc0   :  { %v76_v28 = vpop.permute.xlu0 %75 }
  0xc1   :  { %v942_v30 = vpop.permute.xlu1 %295 }
  0xc4   :  { %v944_v31 = vpop.permute.xlu0 %81 }
  0xc5   :  { %v946_v33 = vpop.permute.xlu1 %77  ;;  %v89_v53 = vsel %vm85_vm0, %v944_v31, %v76_v28 }
  0xc6   :  { %v88_v54 = vsel %vm85_vm0, %v76_v28, %v946_v33  ;;  %v122_v62 = vmul.f32 %v118_v51, %v89_v53 }
  0xc7   :  { %v123_v63 = vmul.f32 %v119_v52, %v88_v54 }
  0xc8   :  { %v137_v37 = vpop.permute.xlu0 %136 }
  0xc9   :  { %v956_v41 = vpop.permute.xlu1 %355  ;;  %v130_v10 = vcombine.low %v122_v62, %v123_v63 }
  0xcb   :  { %v134_v20 = vadd.f32 %v130_v10, %v67_v7 }
  0xcc   :  { %v964_v46 = vpop.permute.xlu0 %142 }
  0xcd   :  { %v967_v47 = vpop.permute.xlu1 %138  ;;  %v148_v59 = vsel %vm144_vm1, %v964_v46, %v137_v37 }
  0xce   :  { %v147_v60 = vsel %vm144_vm1, %v137_v37, %v967_v47  ;;  %v182_v3 = vmul.f32 %v178_v58, %v148_v59  ;;  %v270_v37 = vld [vmem:[#allocation2 + $0x3] ss:$8 sm:$0xf]  ;;  %v224_v59 = vrot.slane %v986_v57, %v1015_v17 }
  0xcf   :  { %v183_v4 = vmul.f32 %v179_v0, %v147_v60  ;;  %v280_v52 = vrot.slane %v270_v37, %v954_v40  ;;  %v284_v63 = vrot.slane %v270_v37, %v1015_v17  ;;  %v228_v0 = vrot.slane %v986_v57, %v1017_v18 }
  0xd0   :  { %v80_v55 = vpop.permute.xlu0 %79 }
  0xd1   :  { %v984_v56 = vpop.permute.xlu1 %415  ;;  %v190_v13 = vcombine.low %v182_v3, %v183_v4  ;;  %v86_v42 = vsel %vm85_vm0, %v80_v55, %v944_v31  ;;  %v87_v43 = vsel %vm85_vm0, %v946_v33, %v80_v55  ;;  %v276_v31 = vrot.slane %v270_v37, %v952_v39 }
  0xd2   :  { %v124_v54 = vmul.f32 %v120_v48, %v87_v43  ;;  %v125_v58 = vmul.f32 %v121_v49, %v86_v42  ;;  %v181_v55 = vmul.f32 %v936_v24, %v168_v36  ;;  %v299_v3 = vmul.f32 %v942_v30, %v280_v52 }
  0xd3   :  { %v194_v29 = vadd.f32 %v190_v13, %v134_v20  ;;  %v298_v24 = vmul.f32 %v942_v30, %v276_v31  ;;  %v68_v13 = vmul.f32 %v996_v61, %v910_v9  ;;  %v300_v57 = vmul.f32 %v942_v30, %v284_v63 }
  0xd4   :  { %v999_v1 = vpop.permute.xlu0 %198 }
  0xd5   :  { %v197_v5 = vpop.permute.xlu1 %196 }
  0xd6   :  { %v207_v11 = vsel %vm204_vm2, %v197_v5, %v999_v1 }
  0xd7   :  { %v243_v21 = vmul.f32 %v239_v14, %v207_v11  ;;  %v240_v11 = vmul.f32 %v940_v26, %v224_v59 }
  0xd8   :  { %v1011_v12 = vpop.permute.xlu0 %475 }
  0xd9   :  { %v203_v16 = vpop.permute.xlu1 %202 }
  0xda   :  { %v208_v19 = vsel %vm204_vm2, %v203_v16, %v197_v5  ;;  %v131_v5 = vcombine.low %v124_v54, %v125_v58 }
  0xdb   :  { %v242_v22 = vmul.f32 %v238_v15, %v208_v19  ;;  %v241_v19 = vmul.f32 %v940_v26, %v228_v0 }
  0xdc   :  { %v259_v28 = vpop.permute.xlu0 %258 }
  0xdd   :  { %v250_v34 = vcombine.low %v242_v22, %v243_v21  ;;  %v141_v35 = vpop.permute.xlu1 %140 }
  0xde   :  { %v145_v33 = vsel %vm144_vm1, %v141_v35, %v964_v46  ;;  %v146_v45 = vsel %vm144_vm1, %v967_v47, %v141_v35  ;;  %v288_v46 = vrot.slane %v270_v37, %v1017_v18 }
  0xdf   :  { %v254_v44 = vadd.f32 %v250_v34, %v194_v29  ;;  %v184_v47 = vmul.f32 %v180_v25, %v146_v45  ;;  %v185_v2 = vmul.f32 %v181_v55, %v145_v33  ;;  %v330_v29 = vld [vmem:[#allocation2 + $0x5] ss:$8 sm:$0xf]  ;;  %v135_v34 = vadd.f32 %v131_v5, %v68_v13  ;;  %v450_v5 = vld [vmem:[#allocation2 + $0x7] ss:$8 sm:$0xf] }
  0xe0   :  { %v1037_v51 = vpop.permute.xlu0 %535  ;;  %v301_v14 = vmul.f32 %v942_v30, %v288_v46  ;;  %v348_v36 = vrot.slane %v330_v29, %v1017_v18  ;;  %v344_v52 = vrot.slane %v330_v29, %v1015_v17 }
  0xe1   :  { %v257_v53 = vpop.permute.xlu1 %256  ;;  %v191_v20 = vcombine.low %v184_v47, %v185_v2  ;;  %v390_v47 = vld [vmem:[#allocation2 + $0x6] ss:$8 sm:$0xf] }
  0xe2   :  { %v267_v60 = vsel %vm264_vm3, %v257_v53, %v259_v28  ;;  %v360_v58 = vmul.f32 %v956_v41, %v344_v52  ;;  %v404_v13 = vrot.slane %v390_v47, %v1015_v17 }
  0xe3   :  { %v303_v7 = vmul.f32 %v299_v3, %v267_v60 }
  0xe4   :  { %v1054_v62 = vpop.permute.xlu0 %318 }
  0xe5   :  { %v263_v4 = vpop.permute.xlu1 %262 }
  0xe6   :  { %v268_v6 = vsel %vm264_vm3, %v263_v4, %v257_v53 }
  0xe7   :  { %v302_v10 = vmul.f32 %v298_v24, %v268_v6  ;;  %v340_v24 = vrot.slane %v330_v29, %v954_v40  ;;  %v400_v6 = vrot.slane %v390_v47, %v954_v40 }
  0xe8   :  { %v261_v15 = vpop.permute.xlu0 %260 }
  0xe9   :  { %v310_v21 = vcombine.low %v302_v10, %v303_v7  ;;  %v265_v22 = vsel %vm264_vm3, %v261_v15, %v263_v4  ;;  %v266_v23 = vsel %vm264_vm3, %v259_v28, %v261_v15  ;;  %v201_v27 = vpop.permute.xlu1 %200  ;;  %v195_v28 = vadd.f32 %v191_v20, %v135_v34 }
  0xea   :  { %v304_v35 = vmul.f32 %v300_v57, %v266_v23  ;;  %v205_v61 = vsel %vm204_vm2, %v201_v27, %v203_v16  ;;  %v206_v30 = vsel %vm204_vm2, %v999_v1, %v201_v27  ;;  %v305_v32 = vmul.f32 %v301_v14, %v265_v22  ;;  %v1103_v14 = vld [vmem:[#allocation2 + $0x20] ss:$8 sm:$0xf] }
  0xeb   :  { %v1079_v26 = vadd.f32 %v310_v21, %v254_v44  ;;  %v244_v37 = vmul.f32 %v240_v11, %v206_v30  ;;  %v245_v42 = vmul.f32 %v241_v19, %v205_v61  ;;  %v361_v1 = vmul.f32 %v956_v41, %v348_v36 }
  0xec   :  { %v379_v43 = vpop.permute.xlu0 %378  ;;  %v311_v53 = vcombine.low %v304_v35, %v305_v32  ;;  %v336_v4 = vrot.slane %v330_v29, %v952_v39  ;;  %v396_v10 = vrot.slane %v390_v47, %v952_v39  ;;  %v408_v57 = vrot.slane %v390_v47, %v1017_v18 }
  0xed   :  { %v251_v48 = vcombine.low %v244_v37, %v245_v42  ;;  %v317_v49 = vpop.permute.xlu1 %316  ;;  %v359_v19 = vmul.f32 %v956_v41, %v340_v24  ;;  %v456_v20 = vrot.slane %v450_v5, %v952_v39  ;;  %v468_v27 = vrot.slane %v450_v5, %v1017_v18 }
  0xee   :  { %v327_v15 = vsel %vm324_vm4, %v317_v49, %v1054_v62  ;;  %v358_v21 = vmul.f32 %v956_v41, %v336_v4  ;;  %v460_v29 = vrot.slane %v450_v5, %v954_v40  ;;  %v419_v35 = vmul.f32 %v984_v56, %v400_v6 }
  0xef   :  { %v255_v31 = vadd.f32 %v251_v48, %v195_v28  ;;  %v516_v61 = vrot.slane %v1103_v14, %v952_v39  ;;  %v418_v32 = vmul.f32 %v984_v56, %v396_v10  ;;  %v421_v52 = vmul.f32 %v984_v56, %v408_v57 }
  0xf0   :  { %v323_v16 = vpop.permute.xlu0 %322  ;;  %v362_v30 = vmul.f32 %v358_v21, %v327_v15  ;;  %v479_v39 = vmul.f32 %v1011_v12, %v460_v29 }
  0xf1   :  { %v328_v44 = vsel %vm324_vm4, %v323_v16, %v317_v49  ;;  %v315_v54 = vadd.f32 %v311_v53, %v255_v31  ;;  %v321_v33 = vpop.permute.xlu1 %320  ;;  %v420_v49 = vmul.f32 %v984_v56, %v404_v13  ;;  %v524_v56 = vrot.slane %v1103_v14, %v1015_v17 }
  0xf2   :  { %v365_v45 = vmul.f32 %v361_v1, %v328_v44  ;;  %v325_v25 = vsel %vm324_vm4, %v321_v33, %v323_v16  ;;  %v326_v7 = vsel %vm324_vm4, %v1054_v62, %v321_v33  ;;  %v464_v62 = vrot.slane %v450_v5, %v1015_v17 }
  0xf3   :  { %v364_v55 = vmul.f32 %v360_v58, %v325_v25  ;;  %v363_v34 = vmul.f32 %v359_v19, %v326_v7  ;;  %v478_v1 = vmul.f32 %v1011_v12, %v456_v20  ;;  %v538_v5 = vmul.f32 %v1037_v51, %v516_v61 }
  0xf4   :  { %v439_v46 = vpop.permute.xlu0 %438 }
  0xf5   :  { %v371_v59 = vcombine.low %v364_v55, %v365_v45  ;;  %v377_v60 = vpop.permute.xlu1 %376  ;;  %v370_v53 = vcombine.low %v362_v30, %v363_v34 }
  0xf6   :  { %v387_v41 = vsel %vm384_vm5, %v377_v60, %v379_v43 }
  0xf7   :  { %v1090_v63 = vadd.f32 %v371_v59, %v315_v54  ;;  %v422_v31 = vmul.f32 %v418_v32, %v387_v41  ;;  %v480_v59 = vmul.f32 %v1011_v12, %v464_v62 }
  0xf8   :  { %v1092_v2 = vpop.permute.xlu0 %559 }
  0xf9   :  { %v381_v0 = vpop.permute.xlu1 %380  ;;  %v567_v21 = vrot.slane %v1092_v2, %v973_v50 }
  0xfa   :  { %v386_v22 = vsel %vm384_vm5, %v379_v43, %v381_v0  ;;  %v520_v43 = vrot.slane %v1103_v14, %v954_v40  ;;  %v481_v40 = vmul.f32 %v1011_v12, %v468_v27 }
  0xfb   :  { %v423_v42 = vmul.f32 %v419_v35, %v386_v22 }
  0xfc   :  { %v499_v23 = vpop.permute.xlu0 %498  ;;  %v539_v12 = vmul.f32 %v1037_v51, %v520_v43 }
  0xfd   :  { %v437_v3 = vpop.permute.xlu1 %436  ;;  %v430_v25 = vcombine.low %v422_v31, %v423_v42 }
  0xfe   :  { %v447_v16 = vsel %vm444_vm6, %v437_v3, %v439_v46 }
  0xff   :  { %v482_v55 = vmul.f32 %v478_v1, %v447_v16 }
 0x100   :  { %v443_v44 = vpop.permute.xlu0 %442 }
 0x101   :  { %v441_v11 = vpop.permute.xlu1 %440 }
 0x102   :  { %v446_v36 = vsel %vm444_vm6, %v439_v46, %v441_v11  ;;  %v374_v46 = vadd.f32 %v370_v53, %v1079_v26  ;;  %v445_v47 = vsel %vm444_vm6, %v441_v11, %v443_v44  ;;  %v540_v11 = vmul.f32 %v1037_v51, %v524_v56 }
 0x103   :  { %v483_v54 = vmul.f32 %v479_v39, %v446_v36  ;;  %v484_v10 = vmul.f32 %v480_v59, %v445_v47  ;;  %v842_v47 = vmov 10  }
 0x104   :  { %v434_v7 = vadd.f32 %v430_v25, %v374_v46  ;;  %714 = vset.pattern.permute.xlu1 %v842_v47 }
 0x105   :  { %v383_v37 = vpop.permute.xlu1 %382  ;;  %v490_v17 = vcombine.low %v482_v55, %v483_v54 }
 0x106   :  { %v385_v28 = vsel %vm384_vm5, %v381_v0, %v383_v37  ;;  %v388_v48 = vsel %vm384_vm5, %v383_v37, %v377_v60  ;;  %v528_v60 = vrot.slane %v1103_v14, %v1017_v18  ;;  %v448_v0 = vsel %vm444_vm6, %v443_v44, %v437_v3 }
 0x107   :  { %v424_v58 = vmul.f32 %v420_v49, %v385_v28  ;;  %v425_v33 = vmul.f32 %v421_v52, %v388_v48  ;;  %v485_v26 = vmul.f32 %v481_v40, %v448_v0  ;;  %v494_v57 = vadd.f32 %v490_v17, %v434_v7 }
 0x108   :  { %v541_v19 = vmul.f32 %v1037_v51, %v528_v60 }
 0x109   :  { %v497_v45 = vpop.permute.xlu1 %496  ;;  %v431_v4 = vcombine.low %v424_v58, %v425_v33  ;;  %v491_v27 = vcombine.low %v484_v10, %v485_v26  ;;  %v843_v26 = vmov 11   ;;  %v621_v10 = vld [vmem:[#allocation5] sm:$0xf] }
 0x10a   :  { %v507_v24 = vsel %vm504_vm7, %v497_v45, %v499_v23  ;;  %715 = vset.pattern.permute.xlu0 %v843_v26 }
 0x10b   :  { %v542_v3 = vmul.f32 %v538_v5, %v507_v24  ;;  %v435_v14 = vadd.f32 %v431_v4, %v1090_v63 }
 0x10d   :  { %v501_v6 = vpop.permute.xlu1 %500  ;;  %v495_v61 = vadd.f32 %v491_v27, %v435_v14 }
 0x10e   :  { %v506_v18 = vsel %vm504_vm7, %v499_v23, %v501_v6 }
 0x10f   :  { %v543_v13 = vmul.f32 %v539_v12, %v506_v18 }
 0x111   :  { %v550_v15 = vcombine.low %v542_v3, %v543_v13  ;;  %v503_v20 = vpop.permute.xlu1 %502 }
 0x112   :  { %v505_v22 = vsel %vm504_vm7, %v501_v6, %v503_v20  ;;  %v508_v23 = vsel %vm504_vm7, %v503_v20, %v497_v45 }
 0x113   :  { %v554_v29 = vadd.f32 %v550_v15, %v494_v57  ;;  %v544_v34 = vmul.f32 %v540_v11, %v505_v22  ;;  %v545_v35 = vmul.f32 %v541_v19, %v508_v23 }
 0x115   :  { %v569_v62 = vadd.f32 %v567_v21, %v554_v29  ;;  %v551_v63 = vcombine.low %v544_v34, %v545_v35 }
 0x117   :  { %v573_v30 = vmul.f32 0.70710677, %v569_v62  ;;  %v555_v32 = vadd.f32 %v551_v63, %v495_v61  ;;  %v571_v37 = vmul.f32 0.5, %v569_v62 }
 0x119   :  { %718 = verf.f32 %v573_v30  ;;  %v570_v51 = vadd.f32 %v567_v21, %v555_v32 }
 0x11b   :  { %v574_v41 = vmul.f32 0.70710677, %v570_v51  ;;  %v572_v38 = vmul.f32 0.5, %v570_v51 }
 0x11d   :  { %720 = verf.f32 %v574_v41 }
 0x123   :  { %v719_v2 = vpop.eup %718 }
 0x124   :  { %v577_v42 = vadd.f32 1.0, %v719_v2 }
 0x126   :  { %v579_v36 = vmul.f32 %v577_v42, %v571_v37 }
 0x127   :  { %v721_v28 = vpop.eup %720 }
 0x128   :  { %v578_v48 = vadd.f32 1.0, %v721_v28  ;;  %v583_v39 = vcombine.high %v579_v36, %v579_v36  ;;  %v597_v49 = vmul.f32 %v579_v36, %v579_v36  ;;  %v588_v43 = vsel %vm587_vm8, %v579_v36, 0.0 }
 0x12a   :  { %v580_v52 = vmul.f32 %v578_v48, %v572_v38  ;;  %v589_v53 = vsel %vm587_vm8, %v583_v39, 0.0  ;;  %v601_v31 = vcombine.high %v597_v49, %v597_v49  ;;  %v605_v1 = vsel %vm587_vm8, %v597_v49, 0.0 }
 0x12b   :  { %v590_v16 = vadd.f32 %v589_v53, %v588_v43 }
 0x12c   :  { %v584_v44 = vcombine.high %v580_v52, %v580_v52  ;;  %v591_v54 = vsel %vm587_vm8, %v580_v52, 0.0  ;;  %v598_v58 = vmul.f32 %v580_v52, %v580_v52  ;;  %v606_v33 = vsel %vm587_vm8, %v601_v31, 0.0 }
 0x12d   :  { %v592_v45 = vadd.f32 %v591_v54, %v590_v16  ;;  %v607_v25 = vadd.f32 %v606_v33, %v605_v1 }
 0x12e   :  { %v593_v56 = vsel %vm587_vm8, %v584_v44, 0.0  ;;  %v602_v55 = vcombine.high %v598_v58, %v598_v58  ;;  %v608_v40 = vsel %vm587_vm8, %v598_v58, 0.0 }
 0x12f   :  { %v594_v59 = vadd.f32 %v593_v56, %v592_v45  ;;  %v609_v60 = vadd.f32 %v608_v40, %v607_v25 }
 0x130   :  { %v610_v46 = vsel %vm587_vm8, %v602_v55, 0.0 }
 0x131   :  { %595 = vadd.xlane.f32.xlu0 %v594_v59  ;;  %v611_v0 = vadd.f32 %v610_v46, %v609_v60 }
 0x133   :  { %612 = vadd.xlane.f32.xlu1 %v611_v0 }
 0x1be   :  { %v596_v24 = vpop.xlane.xlu0 %595 }
 0x1bf   :  { %v614_v17 = vmul.f32 0.001953125, %v596_v24 }
 0x1c0   :  { %v613_v4 = vpop.xlane.xlu1 %612 }
 0x1c1   :  { %v616_v5 = vmul.f32 %v614_v17, %v614_v17  ;;  %v615_v12 = vmul.f32 0.001953125, %v613_v4 }
 0x1c3   :  { %v617_v6 = vsub.f32 %v615_v12, %v616_v5 }
 0x1c5   :  { %v618_v7 = vmax.f32 %v617_v6, 0.0 }
 0x1c7   :  { %v619_v18 = vadd.f32 1e-05, %v618_v7 }
 0x1c9   :  { %722 = vrsqrt.f32 %v619_v18 }
 0x1d3   :  { %v723_v3 = vpop.eup %722 }
 0x1d4   :  { %v622_v13 = vmul.f32 %v723_v3, %v621_v10 }
 0x1d6   :  { %631 = vperm.xlu1 %714, %v622_v13   ;;  %v623_v11 = vmul.f32 %v622_v13, %v614_v17 }
 0x1d8   :  { %625 = vrot.lane.b32.xlu0 %v623_v11, %s834_s23 }
 0x24a   :  { %v626_v57 = vpop.permute.xlu0 %625 }
 0x24b   :  { %v628_v14 = vsub.f32 %v621_v10, %v626_v57 }
 0x24d   :  { %645 = vperm.xlu0 %715, %v628_v14  }
 0x255   :  { %v632_v15 = vpop.permute.xlu1 %631 }
 0x256   :  { %v639_v19 = vrot.slane %v632_v15, %v973_v50 }
 0x258   :  { %v641_v21 = vmul.f32 %v639_v19, %v579_v36  ;;  %v642_v22 = vmul.f32 %v639_v19, %v580_v52 }
 0x2cc   :  { %v646_v20 = vpop.permute.xlu0 %645 }
 0x2cd   :  { %v653_v23 = vrot.slane %v646_v20, %v973_v50 }
 0x2cf   :  { %v655_v27 = vadd.f32 %v653_v23, %v641_v21  ;;  %v656_v29 = vadd.f32 %v653_v23, %v642_v22 }
 0x2d1   :  { %v657_v34 = vadd.f32 %v655_v27, %v908_v8  ;;  %v658_v35 = vadd.f32 %v656_v29, %v910_v9 }
 0x2d3   :  { %659 = vst [vmem:[#allocation8] sm:$0xff] %v657_v34  ;;  %660 = vst [vmem:[#allocation8 + $0x8] sm:$0xff] %v658_v35 }
 0x2d4   :  { %801 = shalt.err (!%p798_p0)
}
 0x2d5   :  { %s802_s6 = scalar_lea.hbm %s1193_s3, 256 }
 0x2d6   :  { %p803_p1 = scmp.ne.s32.totalorder %s1193_s3, %s802_s6  ;;  %p806_p2 = scmp.lt.u32.totalorder %s802_s6, %s1193_s3 }
 0x2d8   :  { %p808_p3 = pnand %p806_p2, %p803_p1 }
 0x2da   :  { %811 = shalt.err (!%p808_p3)
}
 0x2db   :  { %670 = dma.vmem_to_hbm [thread:$0]  %s668_s29, 256, %s1193_s3, [#allocation4]  }
 0x2dc   :  { %816 = dma.done.wait [#allocation4], 256  }
 0x2dd   :  { %817 = vsyncadd [#allocation4], 4294967040 }
 0x2de   :  { %674 = vsyncpa [#allocation3], 1 }
 0x2df   :  { %675 = vsyncpa [#allocation6], 1 }
 0x2e0   :  { %676 = vsyncpa [#allocation4], 1 }

</bundles_post_ra>
